<compile_context>
chip_gen: v5e
topology: v5e:2x2
jax: 0.10.0
libtpu: 0.0.40
codegen_flags: <defaults>
</compile_context>

<pallas_src>
import functools
import math

import jax
import jax.numpy as jnp
import numpy as np
from jax.experimental import pallas as pl
from jax.experimental.pallas import tpu as pltpu


def _layernorm(x, gamma, beta, eps=1e-5):
    # x: (N, D) f32, gamma/beta: (1, D) f32. Biased variance, like torch.
    mean = jnp.mean(x, axis=-1, keepdims=True)
    xc = x - mean
    var = jnp.mean(xc * xc, axis=-1, keepdims=True)
    return xc * jax.lax.rsqrt(var + eps) * gamma + beta


def encoder_layer_kernel(
    x_ref,
    wq_ref, bq_ref, wk_ref, bk_ref, wv_ref, bv_ref, wo_ref, bo_ref,
    g1_ref, be1_ref,
    w1_ref, b1_ref, w2_ref, b2_ref,
    g2_ref, be2_ref,
    o_ref,
    qh_scr, kh_scr, vh_scr, attn_scr,
    *, num_heads, exact_recip,
):
    cdt = wq_ref.dtype                       # compute dtype for MXU (bf16 or f32)
    Bb, S, D = x_ref.shape
    H = num_heads
    dk = D // H
    N = Bb * S

    # ---- flatten activations to lane-dense 2-D blocks (rows = Bb*S) ----
    x32 = x_ref[...].astype(jnp.float32).reshape(N, D)     # residual path (f32)
    x_c = x32.astype(cdt)

    # ---- QKV projections: single big 2-D matmuls, f32 accumulation.
    #      Wq / bq are pre-scaled by 1/sqrt(dk) at weight-prep time. ----
    q2 = jnp.dot(x_c, wq_ref[...], preferred_element_type=jnp.float32) + bq_ref[...]
    k2 = jnp.dot(x_c, wk_ref[...], preferred_element_type=jnp.float32) + bk_ref[...]
    v2 = jnp.dot(x_c, wv_ref[...], preferred_element_type=jnp.float32) + bv_ref[...]

    q3 = q2.astype(cdt).reshape(Bb, S, D)
    k3 = k2.astype(cdt).reshape(Bb, S, D)
    v3 = v2.astype(cdt).reshape(Bb, S, D)

    # ---- layout-only head split: write (head, batch) slabs into VMEM scratch
    #      so attention below is ONE batched contraction over all heads x batch ----
    for h in range(H):
        sl = slice(h * dk, (h + 1) * dk)     # static lane slice
        qh_scr[h * Bb:(h + 1) * Bb] = q3[:, :, sl]
        kh_scr[h * Bb:(h + 1) * Bb] = k3[:, :, sl]
        vh_scr[h * Bb:(h + 1) * Bb] = v3[:, :, sl]

    qh = qh_scr[...]                         # (H*Bb, S, dk)
    kh = kh_scr[...]                         # (H*Bb, S, dk)
    vh = vh_scr[...]                         # (H*Bb, S, dk)

    # ---- batched scaled dot-product attention (scale already folded into Wq;
    #      normalize AFTER the PV matmul to avoid an O(Tq*S) VPU pass) ----
    scores = jnp.einsum("bqd,bkd->bqk", qh, kh,
                        preferred_element_type=jnp.float32)          # (H*Bb, S, S)
    m = jnp.max(scores, axis=-1, keepdims=True)
    e = jnp.exp(scores - m)
    denom = jnp.sum(e, axis=-1, keepdims=True)
    ctx = jnp.einsum("bqk,bkd->bqd", e.astype(cdt), vh,
                     preferred_element_type=jnp.float32)             # (H*Bb, S, dk)
    if exact_recip:
        inv = 1.0 / denom
    else:
        inv = pl.reciprocal(denom, approx=True)                      # EUP slot
    ctx = ctx * inv                                                  # O(H*Bb*S*dk)

    # ---- re-pack heads into (N, D) in place (no concatenate of live heads) ----
    for h in range(H):
        blk = ctx[h * Bb:(h + 1) * Bb].reshape(N, dk)
        attn_scr[:, h * dk:(h + 1) * dk] = blk.astype(cdt)

    # ---- output projection + residual + LayerNorm 1 (f32) ----
    attn = jnp.dot(attn_scr[...], wo_ref[...],
                   preferred_element_type=jnp.float32) + bo_ref[...]
    x1 = _layernorm(x32 + attn, g1_ref[...], be1_ref[...])

    # ---- feed-forward + residual + LayerNorm 2 (f32 accumulation) ----
    hdn = jnp.dot(x1.astype(cdt), w1_ref[...],
                  preferred_element_type=jnp.float32) + b1_ref[...]
    hdn = jnp.maximum(hdn, 0.0)
    ff = jnp.dot(hdn.astype(cdt), w2_ref[...],
                 preferred_element_type=jnp.float32) + b2_ref[...]
    x2 = _layernorm(x1 + ff, g2_ref[...], be2_ref[...])

    o_ref[...] = x2.reshape(Bb, S, D).astype(o_ref.dtype)


def prepare_params(params, num_heads, compute_dtype=jnp.bfloat16):
    """Cast weights ONCE to the MXU compute dtype and fold 1/sqrt(d_k) into Wq/bq."""
    D = params["wq_t"].shape[0]
    d_k = D // num_heads
    scale = jnp.float32(1.0 / math.sqrt(d_k))
    cdt = compute_dtype
    f32 = jnp.float32
    return dict(
        wq_t=(params["wq_t"].astype(f32) * scale).astype(cdt),
        bq=(params["bq"].astype(f32) * scale),
        wk_t=params["wk_t"].astype(cdt), bk=params["bk"].astype(f32),
        wv_t=params["wv_t"].astype(cdt), bv=params["bv"].astype(f32),
        wo_t=params["wo_t"].astype(cdt), bo=params["bo"].astype(f32),
        g1=params["g1"].astype(f32), be1=params["be1"].astype(f32),
        w1_t=params["w1_t"].astype(cdt), b1=params["b1"].astype(f32),
        w2_t=params["w2_t"].astype(cdt), b2=params["b2"].astype(f32),
        g2=params["g2"].astype(f32), be2=params["be2"].astype(f32),
    )


def transformer_encoder_layer(x, prepared, num_heads, *,
                              block_b=None, row_target=256, exact_recip=False):
    B, S, D = x.shape
    cdt = prepared["wq_t"].dtype
    d_ff = prepared["w1_t"].shape[1]
    assert D % num_heads == 0
    d_k = D // num_heads

    # --- tiling: pack batches per grid step targeting ~256 rows (fills the
    #     256-wide MXU on v6e/v7x); keep >=2 grid steps so both v7x TCs work ---
    if block_b is None:
        block_b = min(B, max(1, row_target // S))
        while B % block_b:
            block_b -= 1
        if B >= 2 and B // block_b < 2:
            block_b = max(1, block_b // 2)
            while B % block_b:
                block_b -= 1
    assert B % block_b == 0
    grid = (B // block_b,)

    def rep_spec(shape):
        # Grid-invariant operand: constant index_map; single-buffer it (the
        # second pipeline buffer is dead weight and wastes VMEM, esp. on v7x).
        nd = len(shape)
        idx = lambda b, _nd=nd: (0,) * _nd
        try:
            return pl.BlockSpec(shape, idx, pipeline_mode=pl.Buffered(1))
        except Exception:
            return pl.BlockSpec(shape, idx)

    in_specs = [
        pl.BlockSpec((block_b, S, D), lambda b: (b, 0, 0)),   # x (full seq per block)
        rep_spec((D, D)), rep_spec((1, D)),          # Wq^T (pre-scaled), bq (pre-scaled)
        rep_spec((D, D)), rep_spec((1, D)),          # Wk^T, bk
        rep_spec((D, D)), rep_spec((1, D)),          # Wv^T, bv
        rep_spec((D, D)), rep_spec((1, D)),          # Wo^T, bo
        rep_spec((1, D)), rep_spec((1, D)),          # gamma1, beta1
        rep_spec((D, d_ff)), rep_spec((1, d_ff)),    # W1^T, b1
        rep_spec((d_ff, D)), rep_spec((1, D)),       # W2^T, b2
        rep_spec((1, D)), rep_spec((1, D)),          # gamma2, beta2
    ]

    scratch_shapes = [
        pltpu.VMEM((num_heads * block_b, S, d_k), cdt),   # q heads
        pltpu.VMEM((num_heads * block_b, S, d_k), cdt),   # k heads
        pltpu.VMEM((num_heads * block_b, S, d_k), cdt),   # v heads
        pltpu.VMEM((block_b * S, D), cdt),                # repacked attn ctx
    ]

    kernel = functools.partial(encoder_layer_kernel,
                               num_heads=num_heads, exact_recip=exact_recip)

    # --- advisory cost estimate (now includes output writeback) ---
    w_item = jnp.dtype(cdt).itemsize
    wbytes = (4 * D * D + 2 * D * d_ff) * w_item
    bias_bytes = (9 * D + d_ff) * 4
    flops = 2 * B * S * (4 * D * D + 2 * D * d_ff) + 4 * B * S * S * D
    transcendentals = B * num_heads * S * S
    bytes_accessed = 2 * B * S * D * x.dtype.itemsize + wbytes + bias_bytes

    # --- explicit VMEM budget, clamped generation-aware (leave headroom for
    #     compiler-internal scratch; ~112 MiB on 128 MiB chips, ~56 MiB on v7x) ---
    act_blk = block_b * S * D * x.dtype.itemsize * 2
    out_blk = block_b * S * D * x.dtype.itemsize * 2
    scr = (3 * num_heads * block_b * S * d_k + block_b * S * D) * w_item
    scores_tmp = num_heads * block_b * S * S * 4 * 2
    ffn_tmp = block_b * S * d_ff * 4 * 2
    need = (2 * wbytes + 2 * bias_bytes + act_blk + out_blk
            + scr + scores_tmp + ffn_tmp + (4 << 20))
    try:
        phys = pltpu.get_tpu_info().vmem_capacity_bytes
    except Exception:
        phys = 128 << 20
    headroom = (16 << 20) if phys > (64 << 20) else (8 << 20)
    vmem_limit = int(min(max(need, 32 << 20), phys - headroom))

    return pl.pallas_call(
        kernel,
        out_shape=jax.ShapeDtypeStruct((B, S, D), x.dtype),
        grid_spec=pltpu.PrefetchScalarGridSpec(
            num_scalar_prefetch=0,
            grid=grid,
            in_specs=in_specs,
            out_specs=pl.BlockSpec((block_b, S, D), lambda b: (b, 0, 0)),
            scratch_shapes=scratch_shapes,
        ),
        compiler_params=pltpu.CompilerParams(
            dimension_semantics=("parallel",),
            vmem_limit_bytes=vmem_limit,
        ),
        cost_estimate=pl.CostEstimate(
            flops=flops,
            transcendentals=transcendentals,
            bytes_accessed=bytes_accessed,
        ),
    )(
        x,
        prepared["wq_t"], prepared["bq"], prepared["wk_t"], prepared["bk"],
        prepared["wv_t"], prepared["bv"], prepared["wo_t"], prepared["bo"],
        prepared["g1"], prepared["be1"],
        prepared["w1_t"], prepared["b1"], prepared["w2_t"], prepared["b2"],
        prepared["g2"], prepared["be2"],
    )


def reference(x, p, num_heads):
    B, S, D = x.shape
    d_k = D // num_heads
    q = x @ p["wq_t"] + p["bq"]
    k = x @ p["wk_t"] + p["bk"]
    v = x @ p["wv_t"] + p["bv"]
    q = q.reshape(B, S, num_heads, d_k).transpose(0, 2, 1, 3)
    k = k.reshape(B, S, num_heads, d_k).transpose(0, 2, 1, 3)
    v = v.reshape(B, S, num_heads, d_k).transpose(0, 2, 1, 3)
    scores = jnp.einsum("bhqd,bhkd->bhqk", q, k) / np.sqrt(d_k)
    probs = jax.nn.softmax(scores, axis=-1)
    attn = jnp.einsum("bhqk,bhkd->bhqd", probs, v).transpose(0, 2, 1, 3).reshape(B, S, D)
    attn = attn @ p["wo_t"] + p["bo"]

    def ln(z, g, b):
        mean = jnp.mean(z, axis=-1, keepdims=True)
        var = jnp.mean((z - mean) ** 2, axis=-1, keepdims=True)
        return (z - mean) / jnp.sqrt(var + 1e-5) * g + b

    x1 = ln(x + attn, p["g1"], p["be1"])
    h = jnp.maximum(x1 @ p["w1_t"] + p["b1"], 0.0)
    ff = h @ p["w2_t"] + p["b2"]
    return ln(x1 + ff, p["g2"], p["be2"])


if __name__ == "__main__":
    # TODO(synk): dropout is stochastic in torch train mode; implemented as identity (eval mode).
    B, S, D, H, DFF = 2, 8, 32, 4, 64
    key = jax.random.PRNGKey(0)
    keys = jax.random.split(key, 16)

    def init(k, shape, scale=0.1):
        return (scale * jax.random.normal(k, shape)).astype(jnp.float32)

    params = {
        "wq_t": init(keys[0], (D, D)), "bq": init(keys[1], (1, D)),
        "wk_t": init(keys[2], (D, D)), "bk": init(keys[3], (1, D)),
        "wv_t": init(keys[4], (D, D)), "bv": init(keys[5], (1, D)),
        "wo_t": init(keys[6], (D, D)), "bo": init(keys[7], (1, D)),
        "g1": jnp.ones((1, D), jnp.float32), "be1": jnp.zeros((1, D), jnp.float32),
        "w1_t": init(keys[8], (D, DFF)), "b1": init(keys[9], (1, DFF)),
        "w2_t": init(keys[10], (DFF, D)), "b2": init(keys[11], (1, D)),
        "g2": jnp.ones((1, D), jnp.float32), "be2": jnp.zeros((1, D), jnp.float32),
    }

    x = jax.random.normal(keys[12], (B, S, D), dtype=jnp.float32)
    ref = reference(x, params, H)

    # f32 compute path, exact softmax reciprocal: tight check of structure / numerics.
    prep_f32 = prepare_params(params, H, compute_dtype=jnp.float32)
    out_f32 = jax.block_until_ready(
        transformer_encoder_layer(x, prep_f32, H, exact_recip=True))
    np.testing.assert_allclose(np.asarray(out_f32), np.asarray(ref), rtol=2e-3, atol=2e-3)

    # bf16 compute path (default, MXU-fast): approx reciprocal, looser tolerance.
    prep_bf16 = prepare_params(params, H, compute_dtype=jnp.bfloat16)
    out_bf16 = jax.block_until_ready(transformer_encoder_layer(x, prep_bf16, H))
    np.testing.assert_allclose(np.asarray(out_bf16), np.asarray(ref), rtol=6e-2, atol=6e-2)

    print("KERNEL_OK")
</pallas_src>

<mosaic_0001>
module attributes {stable_mosaic.version = 11 : i64} {
  func.func @encoder_layer_kernel(%arg0: i32, %arg1: memref<1x8x32xf32, #tpu.memory_space<vmem>>, %arg2: memref<32x32xf32, #tpu.memory_space<vmem>>, %arg3: memref<1x32xf32, #tpu.memory_space<vmem>>, %arg4: memref<32x32xf32, #tpu.memory_space<vmem>>, %arg5: memref<1x32xf32, #tpu.memory_space<vmem>>, %arg6: memref<32x32xf32, #tpu.memory_space<vmem>>, %arg7: memref<1x32xf32, #tpu.memory_space<vmem>>, %arg8: memref<32x32xf32, #tpu.memory_space<vmem>>, %arg9: memref<1x32xf32, #tpu.memory_space<vmem>>, %arg10: memref<1x32xf32, #tpu.memory_space<vmem>>, %arg11: memref<1x32xf32, #tpu.memory_space<vmem>>, %arg12: memref<32x64xf32, #tpu.memory_space<vmem>>, %arg13: memref<1x64xf32, #tpu.memory_space<vmem>>, %arg14: memref<64x32xf32, #tpu.memory_space<vmem>>, %arg15: memref<1x32xf32, #tpu.memory_space<vmem>>, %arg16: memref<1x32xf32, #tpu.memory_space<vmem>>, %arg17: memref<1x32xf32, #tpu.memory_space<vmem>>, %arg18: memref<1x8x32xf32, #tpu.memory_space<vmem>>, %arg19: memref<4x8x8xf32, #tpu.memory_space<vmem>>, %arg20: memref<4x8x8xf32, #tpu.memory_space<vmem>>, %arg21: memref<4x8x8xf32, #tpu.memory_space<vmem>>, %arg22: memref<8x32xf32, #tpu.memory_space<vmem>>) attributes {dimension_semantics = [#tpu.dimension_semantics<parallel>], iteration_bounds = array<i64: 2>, scalar_prefetch = 0 : i64, scratch_operands = 4 : i64, tpu.core_type = #tpu.core_type<tc>, window_params = [{transform_indices = @transform_0, window_bounds = array<i64: 1, 8, 32>}, {pipeline_mode = #tpu.pipeline_mode<synchronous>, transform_indices = @transform_1, window_bounds = array<i64: 32, 32>}, {pipeline_mode = #tpu.pipeline_mode<synchronous>, transform_indices = @transform_2, window_bounds = array<i64: 1, 32>}, {pipeline_mode = #tpu.pipeline_mode<synchronous>, transform_indices = @transform_3, window_bounds = array<i64: 32, 32>}, {pipeline_mode = #tpu.pipeline_mode<synchronous>, transform_indices = @transform_4, window_bounds = array<i64: 1, 32>}, {pipeline_mode = #tpu.pipeline_mode<synchronous>, transform_indices = @transform_5, window_bounds = array<i64: 32, 32>}, {pipeline_mode = #tpu.pipeline_mode<synchronous>, transform_indices = @transform_6, window_bounds = array<i64: 1, 32>}, {pipeline_mode = #tpu.pipeline_mode<synchronous>, transform_indices = @transform_7, window_bounds = array<i64: 32, 32>}, {pipeline_mode = #tpu.pipeline_mode<synchronous>, transform_indices = @transform_8, window_bounds = array<i64: 1, 32>}, {pipeline_mode = #tpu.pipeline_mode<synchronous>, transform_indices = @transform_9, window_bounds = array<i64: 1, 32>}, {pipeline_mode = #tpu.pipeline_mode<synchronous>, transform_indices = @transform_10, window_bounds = array<i64: 1, 32>}, {pipeline_mode = #tpu.pipeline_mode<synchronous>, transform_indices = @transform_11, window_bounds = array<i64: 32, 64>}, {pipeline_mode = #tpu.pipeline_mode<synchronous>, transform_indices = @transform_12, window_bounds = array<i64: 1, 64>}, {pipeline_mode = #tpu.pipeline_mode<synchronous>, transform_indices = @transform_13, window_bounds = array<i64: 64, 32>}, {pipeline_mode = #tpu.pipeline_mode<synchronous>, transform_indices = @transform_14, window_bounds = array<i64: 1, 32>}, {pipeline_mode = #tpu.pipeline_mode<synchronous>, transform_indices = @transform_15, window_bounds = array<i64: 1, 32>}, {pipeline_mode = #tpu.pipeline_mode<synchronous>, transform_indices = @transform_16, window_bounds = array<i64: 1, 32>}, {transform_indices = @transform_17, window_bounds = array<i64: 1, 8, 32>}]} {
    %c0 = arith.constant 0 : index
    %c0_0 = arith.constant 0 : index
    %c0_1 = arith.constant 0 : index
    %0 = vector.load %arg1[%c0, %c0_0, %c0_1] : memref<1x8x32xf32, #tpu.memory_space<vmem>>, vector<1x8x32xf32>
    %1 = vector.shape_cast %0 : vector<1x8x32xf32> to vector<8x32xf32>
    %c0_2 = arith.constant 0 : index
    %c0_3 = arith.constant 0 : index
    %2 = vector.load %arg2[%c0_2, %c0_3] : memref<32x32xf32, #tpu.memory_space<vmem>>, vector<32x32xf32>
    %cst = arith.constant dense<0.000000e+00> : vector<8x32xf32>
    %3 = tpu.matmul %1, %2, %cst {dimension_numbers = #tpu.dot_dimension_numbers<[1], [0], [0], [1], [0, 0, 1, 1], [], []>} : vector<8x32xf32>, vector<32x32xf32>, vector<8x32xf32> -> vector<8x32xf32>
    %c0_4 = arith.constant 0 : index
    %c0_5 = arith.constant 0 : index
    %4 = vector.load %arg3[%c0_4, %c0_5] : memref<1x32xf32, #tpu.memory_space<vmem>>, vector<1x32xf32>
    %5 = vector.broadcast %4 : vector<1x32xf32> to vector<8x32xf32>
    %6 = arith.addf %3, %5 : vector<8x32xf32>
    %c0_6 = arith.constant 0 : index
    %c0_7 = arith.constant 0 : index
    %7 = vector.load %arg4[%c0_6, %c0_7] : memref<32x32xf32, #tpu.memory_space<vmem>>, vector<32x32xf32>
    %cst_8 = arith.constant dense<0.000000e+00> : vector<8x32xf32>
    %8 = tpu.matmul %1, %7, %cst_8 {dimension_numbers = #tpu.dot_dimension_numbers<[1], [0], [0], [1], [0, 0, 1, 1], [], []>} : vector<8x32xf32>, vector<32x32xf32>, vector<8x32xf32> -> vector<8x32xf32>
    %c0_9 = arith.constant 0 : index
    %c0_10 = arith.constant 0 : index
    %9 = vector.load %arg5[%c0_9, %c0_10] : memref<1x32xf32, #tpu.memory_space<vmem>>, vector<1x32xf32>
    %10 = vector.broadcast %9 : vector<1x32xf32> to vector<8x32xf32>
    %11 = arith.addf %8, %10 : vector<8x32xf32>
    %c0_11 = arith.constant 0 : index
    %c0_12 = arith.constant 0 : index
    %12 = vector.load %arg6[%c0_11, %c0_12] : memref<32x32xf32, #tpu.memory_space<vmem>>, vector<32x32xf32>
    %cst_13 = arith.constant dense<0.000000e+00> : vector<8x32xf32>
    %13 = tpu.matmul %1, %12, %cst_13 {dimension_numbers = #tpu.dot_dimension_numbers<[1], [0], [0], [1], [0, 0, 1, 1], [], []>} : vector<8x32xf32>, vector<32x32xf32>, vector<8x32xf32> -> vector<8x32xf32>
    %c0_14 = arith.constant 0 : index
    %c0_15 = arith.constant 0 : index
    %14 = vector.load %arg7[%c0_14, %c0_15] : memref<1x32xf32, #tpu.memory_space<vmem>>, vector<1x32xf32>
    %15 = vector.broadcast %14 : vector<1x32xf32> to vector<8x32xf32>
    %16 = arith.addf %13, %15 : vector<8x32xf32>
    %17 = vector.shape_cast %6 : vector<8x32xf32> to vector<1x8x32xf32>
    %18 = vector.shape_cast %11 : vector<8x32xf32> to vector<1x8x32xf32>
    %19 = vector.shape_cast %16 : vector<8x32xf32> to vector<1x8x32xf32>
    %20 = vector.extract_strided_slice %17 {offsets = [0, 0, 0], sizes = [1, 8, 8], strides = [1, 1, 1]} : vector<1x8x32xf32> to vector<1x8x8xf32>
    %c0_16 = arith.constant 0 : index
    %c0_17 = arith.constant 0 : index
    %c0_18 = arith.constant 0 : index
    %21 = vector.load %arg19[%c0_16, %c0_17, %c0_18] : memref<4x8x8xf32, #tpu.memory_space<vmem>>, vector<1x8x8xf32>
    tpu.vector_store %arg19[%c0_16, %c0_17, %c0_18], %20 {strides = array<i32>} : memref<4x8x8xf32, #tpu.memory_space<vmem>>, vector<1x8x8xf32>,
    %22 = vector.extract_strided_slice %18 {offsets = [0, 0, 0], sizes = [1, 8, 8], strides = [1, 1, 1]} : vector<1x8x32xf32> to vector<1x8x8xf32>
    %c0_19 = arith.constant 0 : index
    %c0_20 = arith.constant 0 : index
    %c0_21 = arith.constant 0 : index
    %23 = vector.load %arg20[%c0_19, %c0_20, %c0_21] : memref<4x8x8xf32, #tpu.memory_space<vmem>>, vector<1x8x8xf32>
    tpu.vector_store %arg20[%c0_19, %c0_20, %c0_21], %22 {strides = array<i32>} : memref<4x8x8xf32, #tpu.memory_space<vmem>>, vector<1x8x8xf32>,
    %24 = vector.extract_strided_slice %19 {offsets = [0, 0, 0], sizes = [1, 8, 8], strides = [1, 1, 1]} : vector<1x8x32xf32> to vector<1x8x8xf32>
    %c0_22 = arith.constant 0 : index
    %c0_23 = arith.constant 0 : index
    %c0_24 = arith.constant 0 : index
    %25 = vector.load %arg21[%c0_22, %c0_23, %c0_24] : memref<4x8x8xf32, #tpu.memory_space<vmem>>, vector<1x8x8xf32>
    tpu.vector_store %arg21[%c0_22, %c0_23, %c0_24], %24 {strides = array<i32>} : memref<4x8x8xf32, #tpu.memory_space<vmem>>, vector<1x8x8xf32>,
    %26 = vector.extract_strided_slice %17 {offsets = [0, 0, 8], sizes = [1, 8, 8], strides = [1, 1, 1]} : vector<1x8x32xf32> to vector<1x8x8xf32>
    %c1 = arith.constant 1 : index
    %c0_25 = arith.constant 0 : index
    %c0_26 = arith.constant 0 : index
    %27 = vector.load %arg19[%c1, %c0_25, %c0_26] : memref<4x8x8xf32, #tpu.memory_space<vmem>>, vector<1x8x8xf32>
    tpu.vector_store %arg19[%c1, %c0_25, %c0_26], %26 {strides = array<i32>} : memref<4x8x8xf32, #tpu.memory_space<vmem>>, vector<1x8x8xf32>,
    %28 = vector.extract_strided_slice %18 {offsets = [0, 0, 8], sizes = [1, 8, 8], strides = [1, 1, 1]} : vector<1x8x32xf32> to vector<1x8x8xf32>
    %c1_27 = arith.constant 1 : index
    %c0_28 = arith.constant 0 : index
    %c0_29 = arith.constant 0 : index
    %29 = vector.load %arg20[%c1_27, %c0_28, %c0_29] : memref<4x8x8xf32, #tpu.memory_space<vmem>>, vector<1x8x8xf32>
    tpu.vector_store %arg20[%c1_27, %c0_28, %c0_29], %28 {strides = array<i32>} : memref<4x8x8xf32, #tpu.memory_space<vmem>>, vector<1x8x8xf32>,
    %30 = vector.extract_strided_slice %19 {offsets = [0, 0, 8], sizes = [1, 8, 8], strides = [1, 1, 1]} : vector<1x8x32xf32> to vector<1x8x8xf32>
    %c1_30 = arith.constant 1 : index
    %c0_31 = arith.constant 0 : index
    %c0_32 = arith.constant 0 : index
    %31 = vector.load %arg21[%c1_30, %c0_31, %c0_32] : memref<4x8x8xf32, #tpu.memory_space<vmem>>, vector<1x8x8xf32>
    tpu.vector_store %arg21[%c1_30, %c0_31, %c0_32], %30 {strides = array<i32>} : memref<4x8x8xf32, #tpu.memory_space<vmem>>, vector<1x8x8xf32>,
    %32 = vector.extract_strided_slice %17 {offsets = [0, 0, 16], sizes = [1, 8, 8], strides = [1, 1, 1]} : vector<1x8x32xf32> to vector<1x8x8xf32>
    %c2 = arith.constant 2 : index
    %c0_33 = arith.constant 0 : index
    %c0_34 = arith.constant 0 : index
    %33 = vector.load %arg19[%c2, %c0_33, %c0_34] : memref<4x8x8xf32, #tpu.memory_space<vmem>>, vector<1x8x8xf32>
    tpu.vector_store %arg19[%c2, %c0_33, %c0_34], %32 {strides = array<i32>} : memref<4x8x8xf32, #tpu.memory_space<vmem>>, vector<1x8x8xf32>,
    %34 = vector.extract_strided_slice %18 {offsets = [0, 0, 16], sizes = [1, 8, 8], strides = [1, 1, 1]} : vector<1x8x32xf32> to vector<1x8x8xf32>
    %c2_35 = arith.constant 2 : index
    %c0_36 = arith.constant 0 : index
    %c0_37 = arith.constant 0 : index
    %35 = vector.load %arg20[%c2_35, %c0_36, %c0_37] : memref<4x8x8xf32, #tpu.memory_space<vmem>>, vector<1x8x8xf32>
    tpu.vector_store %arg20[%c2_35, %c0_36, %c0_37], %34 {strides = array<i32>} : memref<4x8x8xf32, #tpu.memory_space<vmem>>, vector<1x8x8xf32>,
    %36 = vector.extract_strided_slice %19 {offsets = [0, 0, 16], sizes = [1, 8, 8], strides = [1, 1, 1]} : vector<1x8x32xf32> to vector<1x8x8xf32>
    %c2_38 = arith.constant 2 : index
    %c0_39 = arith.constant 0 : index
    %c0_40 = arith.constant 0 : index
    %37 = vector.load %arg21[%c2_38, %c0_39, %c0_40] : memref<4x8x8xf32, #tpu.memory_space<vmem>>, vector<1x8x8xf32>
    tpu.vector_store %arg21[%c2_38, %c0_39, %c0_40], %36 {strides = array<i32>} : memref<4x8x8xf32, #tpu.memory_space<vmem>>, vector<1x8x8xf32>,
    %38 = vector.extract_strided_slice %17 {offsets = [0, 0, 24], sizes = [1, 8, 8], strides = [1, 1, 1]} : vector<1x8x32xf32> to vector<1x8x8xf32>
    %c3 = arith.constant 3 : index
    %c0_41 = arith.constant 0 : index
    %c0_42 = arith.constant 0 : index
    %39 = vector.load %arg19[%c3, %c0_41, %c0_42] : memref<4x8x8xf32, #tpu.memory_space<vmem>>, vector<1x8x8xf32>
    tpu.vector_store %arg19[%c3, %c0_41, %c0_42], %38 {strides = array<i32>} : memref<4x8x8xf32, #tpu.memory_space<vmem>>, vector<1x8x8xf32>,
    %40 = vector.extract_strided_slice %18 {offsets = [0, 0, 24], sizes = [1, 8, 8], strides = [1, 1, 1]} : vector<1x8x32xf32> to vector<1x8x8xf32>
    %c3_43 = arith.constant 3 : index
    %c0_44 = arith.constant 0 : index
    %c0_45 = arith.constant 0 : index
    %41 = vector.load %arg20[%c3_43, %c0_44, %c0_45] : memref<4x8x8xf32, #tpu.memory_space<vmem>>, vector<1x8x8xf32>
    tpu.vector_store %arg20[%c3_43, %c0_44, %c0_45], %40 {strides = array<i32>} : memref<4x8x8xf32, #tpu.memory_space<vmem>>, vector<1x8x8xf32>,
    %42 = vector.extract_strided_slice %19 {offsets = [0, 0, 24], sizes = [1, 8, 8], strides = [1, 1, 1]} : vector<1x8x32xf32> to vector<1x8x8xf32>
    %c3_46 = arith.constant 3 : index
    %c0_47 = arith.constant 0 : index
    %c0_48 = arith.constant 0 : index
    %43 = vector.load %arg21[%c3_46, %c0_47, %c0_48] : memref<4x8x8xf32, #tpu.memory_space<vmem>>, vector<1x8x8xf32>
    tpu.vector_store %arg21[%c3_46, %c0_47, %c0_48], %42 {strides = array<i32>} : memref<4x8x8xf32, #tpu.memory_space<vmem>>, vector<1x8x8xf32>,
    %c0_49 = arith.constant 0 : index
    %c0_50 = arith.constant 0 : index
    %c0_51 = arith.constant 0 : index
    %44 = vector.load %arg19[%c0_49, %c0_50, %c0_51] : memref<4x8x8xf32, #tpu.memory_space<vmem>>, vector<4x8x8xf32>
    %c0_52 = arith.constant 0 : index
    %c0_53 = arith.constant 0 : index
    %c0_54 = arith.constant 0 : index
    %45 = vector.load %arg20[%c0_52, %c0_53, %c0_54] : memref<4x8x8xf32, #tpu.memory_space<vmem>>, vector<4x8x8xf32>
    %c0_55 = arith.constant 0 : index
    %c0_56 = arith.constant 0 : index
    %c0_57 = arith.constant 0 : index
    %46 = vector.load %arg21[%c0_55, %c0_56, %c0_57] : memref<4x8x8xf32, #tpu.memory_space<vmem>>, vector<4x8x8xf32>
    "tpu.trace_start"() <{level = 10 : i32, message = "bqd,bkd->bqk"}> : () -> ()
    %cst_58 = arith.constant dense<0.000000e+00> : vector<4x8x8xf32>
    %47 = tpu.matmul %44, %45, %cst_58 {dimension_numbers = #tpu.dot_dimension_numbers<[2], [2], [1], [1], [0, 0, 0, 1, 1, 1], [0], [0]>} : vector<4x8x8xf32>, vector<4x8x8xf32>, vector<4x8x8xf32> -> vector<4x8x8xf32>
    "tpu.trace_stop"() : () -> ()
    %cst_59 = arith.constant dense<0xFF800000> : vector<4x8xf32>
    %48 = vector.multi_reduction <maximumf>, %47, %cst_59 [2] : vector<4x8x8xf32> to vector<4x8xf32>
    %49 = vector.shape_cast %48 : vector<4x8xf32> to vector<4x8x1xf32>
    %50 = vector.broadcast %49 : vector<4x8x1xf32> to vector<4x8x8xf32>
    %51 = arith.subf %47, %50 : vector<4x8x8xf32>
    %52 = math.exp %51 : vector<4x8x8xf32>
    %cst_60 = arith.constant dense<0.000000e+00> : vector<4x8xf32>
    %53 = vector.multi_reduction <add>, %52, %cst_60 [2] : vector<4x8x8xf32> to vector<4x8xf32>
    %54 = vector.shape_cast %53 : vector<4x8xf32> to vector<4x8x1xf32>
    "tpu.trace_start"() <{level = 10 : i32, message = "bqk,bkd->bqd"}> : () -> ()
    %cst_61 = arith.constant dense<0.000000e+00> : vector<4x8x8xf32>
    %55 = tpu.matmul %52, %46, %cst_61 {dimension_numbers = #tpu.dot_dimension_numbers<[2], [1], [1], [2], [0, 0, 0, 1, 1, 2], [0], [0]>} : vector<4x8x8xf32>, vector<4x8x8xf32>, vector<4x8x8xf32> -> vector<4x8x8xf32>
    "tpu.trace_stop"() : () -> ()
    %cst_62 = arith.constant 1.000000e+00 : f32
    %56 = vector.broadcast %cst_62 : f32 to vector<4x8x1xf32>
    %57 = arith.divf %56, %54 : vector<4x8x1xf32>
    %58 = vector.broadcast %57 : vector<4x8x1xf32> to vector<4x8x8xf32>
    %59 = arith.mulf %55, %58 : vector<4x8x8xf32>
    %60 = vector.extract_strided_slice %59 {offsets = [0, 0, 0], sizes = [1, 8, 8], strides = [1, 1, 1]} : vector<4x8x8xf32> to vector<1x8x8xf32>
    %61 = vector.shape_cast %60 : vector<1x8x8xf32> to vector<8x8xf32>
    %c0_63 = arith.constant 0 : index
    %c0_64 = arith.constant 0 : index
    %62 = vector.load %arg22[%c0_63, %c0_64] : memref<8x32xf32, #tpu.memory_space<vmem>>, vector<8x8xf32>
    tpu.vector_store %arg22[%c0_63, %c0_64], %61 {strides = array<i32>} : memref<8x32xf32, #tpu.memory_space<vmem>>, vector<8x8xf32>,
    %63 = vector.extract_strided_slice %59 {offsets = [1, 0, 0], sizes = [1, 8, 8], strides = [1, 1, 1]} : vector<4x8x8xf32> to vector<1x8x8xf32>
    %64 = vector.shape_cast %63 : vector<1x8x8xf32> to vector<8x8xf32>
    %c0_65 = arith.constant 0 : index
    %c8 = arith.constant 8 : index
    %65 = vector.load %arg22[%c0_65, %c8] : memref<8x32xf32, #tpu.memory_space<vmem>>, vector<8x8xf32>
    tpu.vector_store %arg22[%c0_65, %c8], %64 {strides = array<i32>} : memref<8x32xf32, #tpu.memory_space<vmem>>, vector<8x8xf32>,
    %66 = vector.extract_strided_slice %59 {offsets = [2, 0, 0], sizes = [1, 8, 8], strides = [1, 1, 1]} : vector<4x8x8xf32> to vector<1x8x8xf32>
    %67 = vector.shape_cast %66 : vector<1x8x8xf32> to vector<8x8xf32>
    %c0_66 = arith.constant 0 : index
    %c16 = arith.constant 16 : index
    %68 = vector.load %arg22[%c0_66, %c16] : memref<8x32xf32, #tpu.memory_space<vmem>>, vector<8x8xf32>
    tpu.vector_store %arg22[%c0_66, %c16], %67 {strides = array<i32>} : memref<8x32xf32, #tpu.memory_space<vmem>>, vector<8x8xf32>,
    %69 = vector.extract_strided_slice %59 {offsets = [3, 0, 0], sizes = [1, 8, 8], strides = [1, 1, 1]} : vector<4x8x8xf32> to vector<1x8x8xf32>
    %70 = vector.shape_cast %69 : vector<1x8x8xf32> to vector<8x8xf32>
    %c0_67 = arith.constant 0 : index
    %c24 = arith.constant 24 : index
    %71 = vector.load %arg22[%c0_67, %c24] : memref<8x32xf32, #tpu.memory_space<vmem>>, vector<8x8xf32>
    tpu.vector_store %arg22[%c0_67, %c24], %70 {strides = array<i32>} : memref<8x32xf32, #tpu.memory_space<vmem>>, vector<8x8xf32>,
    %c0_68 = arith.constant 0 : index
    %c0_69 = arith.constant 0 : index
    %72 = vector.load %arg22[%c0_68, %c0_69] : memref<8x32xf32, #tpu.memory_space<vmem>>, vector<8x32xf32>
    %c0_70 = arith.constant 0 : index
    %c0_71 = arith.constant 0 : index
    %73 = vector.load %arg8[%c0_70, %c0_71] : memref<32x32xf32, #tpu.memory_space<vmem>>, vector<32x32xf32>
    %cst_72 = arith.constant dense<0.000000e+00> : vector<8x32xf32>
    %74 = tpu.matmul %72, %73, %cst_72 {dimension_numbers = #tpu.dot_dimension_numbers<[1], [0], [0], [1], [0, 0, 1, 1], [], []>} : vector<8x32xf32>, vector<32x32xf32>, vector<8x32xf32> -> vector<8x32xf32>
    %c0_73 = arith.constant 0 : index
    %c0_74 = arith.constant 0 : index
    %75 = vector.load %arg9[%c0_73, %c0_74] : memref<1x32xf32, #tpu.memory_space<vmem>>, vector<1x32xf32>
    %76 = vector.broadcast %75 : vector<1x32xf32> to vector<8x32xf32>
    %77 = arith.addf %74, %76 : vector<8x32xf32>
    %78 = arith.addf %1, %77 : vector<8x32xf32>
    %c0_75 = arith.constant 0 : index
    %c0_76 = arith.constant 0 : index
    %79 = vector.load %arg10[%c0_75, %c0_76] : memref<1x32xf32, #tpu.memory_space<vmem>>, vector<1x32xf32>
    %c0_77 = arith.constant 0 : index
    %c0_78 = arith.constant 0 : index
    %80 = vector.load %arg11[%c0_77, %c0_78] : memref<1x32xf32, #tpu.memory_space<vmem>>, vector<1x32xf32>
    %cst_79 = arith.constant dense<0.000000e+00> : vector<8xf32>
    %81 = vector.multi_reduction <add>, %78, %cst_79 [1] : vector<8x32xf32> to vector<8xf32>
    %82 = vector.shape_cast %81 : vector<8xf32> to vector<8x1xf32>
    %cst_80 = arith.constant 3.200000e+01 : f32
    %83 = vector.broadcast %cst_80 : f32 to vector<8x1xf32>
    %84 = arith.divf %82, %83 : vector<8x1xf32>
    %85 = vector.broadcast %84 : vector<8x1xf32> to vector<8x32xf32>
    %86 = arith.subf %78, %85 : vector<8x32xf32>
    %87 = arith.mulf %86, %86 : vector<8x32xf32>
    %cst_81 = arith.constant dense<0.000000e+00> : vector<8xf32>
    %88 = vector.multi_reduction <add>, %87, %cst_81 [1] : vector<8x32xf32> to vector<8xf32>
    %89 = vector.shape_cast %88 : vector<8xf32> to vector<8x1xf32>
    %cst_82 = arith.constant 3.200000e+01 : f32
    %90 = vector.broadcast %cst_82 : f32 to vector<8x1xf32>
    %91 = arith.divf %89, %90 : vector<8x1xf32>
    %cst_83 = arith.constant 9.99999974E-6 : f32
    %92 = vector.broadcast %cst_83 : f32 to vector<8x1xf32>
    %93 = arith.addf %91, %92 : vector<8x1xf32>
    %94 = math.rsqrt %93 : vector<8x1xf32>
    %95 = vector.broadcast %94 : vector<8x1xf32> to vector<8x32xf32>
    %96 = arith.mulf %86, %95 : vector<8x32xf32>
    %97 = vector.broadcast %79 : vector<1x32xf32> to vector<8x32xf32>
    %98 = arith.mulf %96, %97 : vector<8x32xf32>
    %99 = vector.broadcast %80 : vector<1x32xf32> to vector<8x32xf32>
    %100 = arith.addf %98, %99 : vector<8x32xf32>
    %c0_84 = arith.constant 0 : index
    %c0_85 = arith.constant 0 : index
    %101 = vector.load %arg12[%c0_84, %c0_85] : memref<32x64xf32, #tpu.memory_space<vmem>>, vector<32x64xf32>
    %cst_86 = arith.constant dense<0.000000e+00> : vector<8x64xf32>
    %102 = tpu.matmul %100, %101, %cst_86 {dimension_numbers = #tpu.dot_dimension_numbers<[1], [0], [0], [1], [0, 0, 1, 1], [], []>} : vector<8x32xf32>, vector<32x64xf32>, vector<8x64xf32> -> vector<8x64xf32>
    %c0_87 = arith.constant 0 : index
    %c0_88 = arith.constant 0 : index
    %103 = vector.load %arg13[%c0_87, %c0_88] : memref<1x64xf32, #tpu.memory_space<vmem>>, vector<1x64xf32>
    %104 = vector.broadcast %103 : vector<1x64xf32> to vector<8x64xf32>
    %105 = arith.addf %102, %104 : vector<8x64xf32>
    %cst_89 = arith.constant 0.000000e+00 : f32
    %106 = vector.broadcast %cst_89 : f32 to vector<8x64xf32>
    %107 = arith.maximumf %105, %106 : vector<8x64xf32>
    %c0_90 = arith.constant 0 : index
    %c0_91 = arith.constant 0 : index
    %108 = vector.load %arg14[%c0_90, %c0_91] : memref<64x32xf32, #tpu.memory_space<vmem>>, vector<64x32xf32>
    %cst_92 = arith.constant dense<0.000000e+00> : vector<8x32xf32>
    %109 = tpu.matmul %107, %108, %cst_92 {dimension_numbers = #tpu.dot_dimension_numbers<[1], [0], [0], [1], [0, 0, 1, 1], [], []>} : vector<8x64xf32>, vector<64x32xf32>, vector<8x32xf32> -> vector<8x32xf32>
    %c0_93 = arith.constant 0 : index
    %c0_94 = arith.constant 0 : index
    %110 = vector.load %arg15[%c0_93, %c0_94] : memref<1x32xf32, #tpu.memory_space<vmem>>, vector<1x32xf32>
    %111 = vector.broadcast %110 : vector<1x32xf32> to vector<8x32xf32>
    %112 = arith.addf %109, %111 : vector<8x32xf32>
    %113 = arith.addf %100, %112 : vector<8x32xf32>
    %c0_95 = arith.constant 0 : index
    %c0_96 = arith.constant 0 : index
    %114 = vector.load %arg16[%c0_95, %c0_96] : memref<1x32xf32, #tpu.memory_space<vmem>>, vector<1x32xf32>
    %c0_97 = arith.constant 0 : index
    %c0_98 = arith.constant 0 : index
    %115 = vector.load %arg17[%c0_97, %c0_98] : memref<1x32xf32, #tpu.memory_space<vmem>>, vector<1x32xf32>
    %cst_99 = arith.constant dense<0.000000e+00> : vector<8xf32>
    %116 = vector.multi_reduction <add>, %113, %cst_99 [1] : vector<8x32xf32> to vector<8xf32>
    %117 = vector.shape_cast %116 : vector<8xf32> to vector<8x1xf32>
    %cst_100 = arith.constant 3.200000e+01 : f32
    %118 = vector.broadcast %cst_100 : f32 to vector<8x1xf32>
    %119 = arith.divf %117, %118 : vector<8x1xf32>
    %120 = vector.broadcast %119 : vector<8x1xf32> to vector<8x32xf32>
    %121 = arith.subf %113, %120 : vector<8x32xf32>
    %122 = arith.mulf %121, %121 : vector<8x32xf32>
    %cst_101 = arith.constant dense<0.000000e+00> : vector<8xf32>
    %123 = vector.multi_reduction <add>, %122, %cst_101 [1] : vector<8x32xf32> to vector<8xf32>
    %124 = vector.shape_cast %123 : vector<8xf32> to vector<8x1xf32>
    %cst_102 = arith.constant 3.200000e+01 : f32
    %125 = vector.broadcast %cst_102 : f32 to vector<8x1xf32>
    %126 = arith.divf %124, %125 : vector<8x1xf32>
    %cst_103 = arith.constant 9.99999974E-6 : f32
    %127 = vector.broadcast %cst_103 : f32 to vector<8x1xf32>
    %128 = arith.addf %126, %127 : vector<8x1xf32>
    %129 = math.rsqrt %128 : vector<8x1xf32>
    %130 = vector.broadcast %129 : vector<8x1xf32> to vector<8x32xf32>
    %131 = arith.mulf %121, %130 : vector<8x32xf32>
    %132 = vector.broadcast %114 : vector<1x32xf32> to vector<8x32xf32>
    %133 = arith.mulf %131, %132 : vector<8x32xf32>
    %134 = vector.broadcast %115 : vector<1x32xf32> to vector<8x32xf32>
    %135 = arith.addf %133, %134 : vector<8x32xf32>
    %136 = vector.shape_cast %135 : vector<8x32xf32> to vector<1x8x32xf32>
    %c0_104 = arith.constant 0 : index
    %c0_105 = arith.constant 0 : index
    %c0_106 = arith.constant 0 : index
    %137 = vector.load %arg18[%c0_104, %c0_105, %c0_106] : memref<1x8x32xf32, #tpu.memory_space<vmem>>, vector<1x8x32xf32>
    tpu.vector_store %arg18[%c0_104, %c0_105, %c0_106], %136 {strides = array<i32>} : memref<1x8x32xf32, #tpu.memory_space<vmem>>, vector<1x8x32xf32>,
    return
  }
  func.func @transform_0(%arg0: i32) -> (i32, i32, i32) {
    %c0_i32 = arith.constant 0 : i32
    %c0_i32_0 = arith.constant 0 : i32
    %c0_i32_1 = arith.constant 0 : i32
    return %arg0, %c0_i32, %c0_i32_0 : i32, i32, i32
  }
  func.func @transform_1(%arg0: i32) -> (i32, i32) {
    %c0_i32 = arith.constant 0 : i32
    %c0_i32_0 = arith.constant 0 : i32
    %c0_i32_1 = arith.constant 0 : i32
    return %c0_i32, %c0_i32_0 : i32, i32
  }
  func.func @transform_2(%arg0: i32) -> (i32, i32) {
    %c0_i32 = arith.constant 0 : i32
    %c0_i32_0 = arith.constant 0 : i32
    %c0_i32_1 = arith.constant 0 : i32
    return %c0_i32, %c0_i32_0 : i32, i32
  }
  func.func @transform_3(%arg0: i32) -> (i32, i32) {
    %c0_i32 = arith.constant 0 : i32
    %c0_i32_0 = arith.constant 0 : i32
    %c0_i32_1 = arith.constant 0 : i32
    return %c0_i32, %c0_i32_0 : i32, i32
  }
  func.func @transform_4(%arg0: i32) -> (i32, i32) {
    %c0_i32 = arith.constant 0 : i32
    %c0_i32_0 = arith.constant 0 : i32
    %c0_i32_1 = arith.constant 0 : i32
    return %c0_i32, %c0_i32_0 : i32, i32
  }
  func.func @transform_5(%arg0: i32) -> (i32, i32) {
    %c0_i32 = arith.constant 0 : i32
    %c0_i32_0 = arith.constant 0 : i32
    %c0_i32_1 = arith.constant 0 : i32
    return %c0_i32, %c0_i32_0 : i32, i32
  }
  func.func @transform_6(%arg0: i32) -> (i32, i32) {
    %c0_i32 = arith.constant 0 : i32
    %c0_i32_0 = arith.constant 0 : i32
    %c0_i32_1 = arith.constant 0 : i32
    return %c0_i32, %c0_i32_0 : i32, i32
  }
  func.func @transform_7(%arg0: i32) -> (i32, i32) {
    %c0_i32 = arith.constant 0 : i32
    %c0_i32_0 = arith.constant 0 : i32
    %c0_i32_1 = arith.constant 0 : i32
    return %c0_i32, %c0_i32_0 : i32, i32
  }
  func.func @transform_8(%arg0: i32) -> (i32, i32) {
    %c0_i32 = arith.constant 0 : i32
    %c0_i32_0 = arith.constant 0 : i32
    %c0_i32_1 = arith.constant 0 : i32
    return %c0_i32, %c0_i32_0 : i32, i32
  }
  func.func @transform_9(%arg0: i32) -> (i32, i32) {
    %c0_i32 = arith.constant 0 : i32
    %c0_i32_0 = arith.constant 0 : i32
    %c0_i32_1 = arith.constant 0 : i32
    return %c0_i32, %c0_i32_0 : i32, i32
  }
  func.func @transform_10(%arg0: i32) -> (i32, i32) {
    %c0_i32 = arith.constant 0 : i32
    %c0_i32_0 = arith.constant 0 : i32
    %c0_i32_1 = arith.constant 0 : i32
    return %c0_i32, %c0_i32_0 : i32, i32
  }
  func.func @transform_11(%arg0: i32) -> (i32, i32) {
    %c0_i32 = arith.constant 0 : i32
    %c0_i32_0 = arith.constant 0 : i32
    %c0_i32_1 = arith.constant 0 : i32
    return %c0_i32, %c0_i32_0 : i32, i32
  }
  func.func @transform_12(%arg0: i32) -> (i32, i32) {
    %c0_i32 = arith.constant 0 : i32
    %c0_i32_0 = arith.constant 0 : i32
    %c0_i32_1 = arith.constant 0 : i32
    return %c0_i32, %c0_i32_0 : i32, i32
  }
  func.func @transform_13(%arg0: i32) -> (i32, i32) {
    %c0_i32 = arith.constant 0 : i32
    %c0_i32_0 = arith.constant 0 : i32
    %c0_i32_1 = arith.constant 0 : i32
    return %c0_i32, %c0_i32_0 : i32, i32
  }
  func.func @transform_14(%arg0: i32) -> (i32, i32) {
    %c0_i32 = arith.constant 0 : i32
    %c0_i32_0 = arith.constant 0 : i32
    %c0_i32_1 = arith.constant 0 : i32
    return %c0_i32, %c0_i32_0 : i32, i32
  }
  func.func @transform_15(%arg0: i32) -> (i32, i32) {
    %c0_i32 = arith.constant 0 : i32
    %c0_i32_0 = arith.constant 0 : i32
    %c0_i32_1 = arith.constant 0 : i32
    return %c0_i32, %c0_i32_0 : i32, i32
  }
  func.func @transform_16(%arg0: i32) -> (i32, i32) {
    %c0_i32 = arith.constant 0 : i32
    %c0_i32_0 = arith.constant 0 : i32
    %c0_i32_1 = arith.constant 0 : i32
    return %c0_i32, %c0_i32_0 : i32, i32
  }
  func.func @transform_17(%arg0: i32) -> (i32, i32, i32) {
    %c0_i32 = arith.constant 0 : i32
    %c0_i32_0 = arith.constant 0 : i32
    %c0_i32_1 = arith.constant 0 : i32
    return %arg0, %c0_i32, %c0_i32_0 : i32, i32, i32
  }
}

</mosaic_0001>

<bundles_post_ra>
// kernel: tpu_custom_call.1
= control target key start
LH: loop header
LB: loop body
LE: loop exit
PB: predicated region body
PF: predicated region fallthrough
CT: control target
= control target key end

     0   :  { %s2081_s0 = inlined_call_operand.hbm [shape: f32[2,8,32], index: 0, kind: input, shape index: {}]   ;;  %s2082_s1 = inlined_call_operand.vmem [shape: f32[32,32], index: 1, kind: input, shape index: {}]   ;;  %s2083_s2 = inlined_call_operand.vmem [shape: f32[1,32], index: 2, kind: input, shape index: {}]   ;;  %s2084_s3 = inlined_call_operand.vmem [shape: f32[32,32], index: 3, kind: input, shape index: {}]   ;;  %s2085_s4 = inlined_call_operand.vmem [shape: f32[1,32], index: 4, kind: input, shape index: {}]   ;;  %s2086_s5 = inlined_call_operand.vmem [shape: f32[32,32], index: 5, kind: input, shape index: {}]   ;;  %s2087_s6 = inlined_call_operand.vmem [shape: f32[1,32], index: 6, kind: input, shape index: {}]   ;;  %s2088_s7 = inlined_call_operand.hbm [shape: f32[32,32], index: 7, kind: input, shape index: {}]   ;;  %s2089_s8 = inlined_call_operand.vmem [shape: f32[1,32], index: 8, kind: input, shape index: {}]   ;;  %s2090_s9 = inlined_call_operand.vmem [shape: f32[1,32], index: 9, kind: input, shape index: {}]   ;;  %s2091_s10 = inlined_call_operand.vmem [shape: f32[1,32], index: 10, kind: input, shape index: {}]   ;;  %s2092_s11 = inlined_call_operand.hbm [shape: f32[32,64], index: 11, kind: input, shape index: {}]   ;;  %s2093_s12 = inlined_call_operand.vmem [shape: f32[1,64], index: 12, kind: input, shape index: {}]   ;;  %s2094_s13 = inlined_call_operand.vmem [shape: f32[64,32], index: 13, kind: input, shape index: {}]   ;;  %s2095_s14 = inlined_call_operand.vmem [shape: f32[1,32], index: 14, kind: input, shape index: {}]   ;;  %s2096_s15 = inlined_call_operand.vmem [shape: f32[1,32], index: 15, kind: input, shape index: {}]   ;;  %s2097_s16 = inlined_call_operand.vmem [shape: f32[1,32], index: 16, kind: input, shape index: {}]   ;;  %s2098_s17 = inlined_call_operand.hbm [shape: f32[2,8,32], index: 17, kind: output, shape index: {}]  }
   0x1   :  { %2109 = sst [smem:[#allocation22_spill]] %s2081_s0 }
   0x2   :  { %2110 = sst [smem:[#allocation23_spill]] %s2082_s1 }
   0x3   :  { %2111 = sst [smem:[#allocation24_spill]] %s2083_s2 }
   0x4   :  { %2112 = sst [smem:[#allocation25_spill]] %s2088_s7 }
   0x5   :  { %2113 = sst [smem:[#allocation26_spill]] %s2092_s11 }
   0x6   :  { %2114 = sst [smem:[#allocation27_spill]] %s2096_s15 }
   0x7   :  { %2115 = sst [smem:[#allocation28_spill]] %s2097_s16 }
   0x8   :  { %2116 = sst [smem:[#allocation29_spill]] %s2098_s17 }
   0x9   :  { %22 = vsyncpa [#allocation7], 0 }
   0xa   :  { %24 = vsyncpa [#allocation7 + $0x1], 0 }
   0xb   :  { %25 = vsyncpa [#allocation10], 0 }
   0xc   :  { %26 = vsyncpa [#allocation8], 0 }
   0xd   :  { %28 = vsyncpa [#allocation8 + $0x1], 0  ;;  %s1751_s24 = smov 0   ;;  %s1753_s25 = smov 0  }
   0xe   :  { %s1755_s26 = smov 0   ;;  %s1757_s27 = smov 0  }
   0xf LB: > { %2117 = sst [smem:[#allocation16_spill]] %s1636_s24  ;;  %s1775_s30 = sadd.s32 4294967295, %s1648_s27   ;;  %s1648_s27 = sphi %s1757_s27, %s2146_s27   ;;  %s1644_s26 = sphi %s1755_s26, %s2148_s26   ;;  %s1640_s25 = sphi %s1753_s25, %s2150_s25   ;;  %s1636_s24 = sphi %s1751_s24, %s2149_s24  }
  0x10   : > { %2118 = sst [smem:[#allocation17_spill]] %s1644_s26  ;;  %p1347_p0 = scmp.ge.s32.totalorder %s1648_s27, 1 }
  0x11   : > { %s2119_s7 = sld [smem:[#allocation25_spill]]  ;;  %p55_p1 = scmp.eq.s32.totalorder %s1775_s30, 0 }
  0x12   : > { %p427_p2 = scmp.lt.s32.totalorder %s1648_s27, 3  ;;  %s1650_s19 = smov [#allocation9]  }
  0x13   : > { %s458_s1 = sshll.u32 %s1650_s19, 4  ;;  %s2121_s11 = sld [smem:[#allocation26_spill]]  ;;  %s459_s1 = int_to_ptr.vmem [resolvable:$true] %s458_s1 }
  0x14   : > { %p1780_p3 = pnand %p1347_p0, %p427_p2  ;;  %s1651_s23 = smov [#allocation11]  }
  0x15   : > { %s481_s28 = sshll.u32 %s1651_s23, 4  ;;  %s1652_s29 = smov 128   ;;  %s482_s28 = int_to_ptr.vmem [resolvable:$true] %s481_s28 }
  0x16   : > { %p1392_p4 = pneg %p1780_p3  ;;  %s1653_s19 = smov 8  }
  0x17   : > { %s456_s0 = sshll.u32 %s2119_s7, 4  ;;  %s1346_s20 = sadd.s32 4294967294, %s1648_s27   ;;  %s457_s0 = int_to_ptr.hbm [resolvable:$true] %s456_s0 }
  0x18   : > { %p1393_p6 = pnand %p1392_p4, %p55_p1  ;;  %s1794_s21 = sadd.s32 1, %s1648_s27  }
  0x19   : > { %s479_s22 = sshll.u32 %s2121_s11, 4  ;;  %2122 = sst [smem:[#allocation18_spill]] %s1794_s21  ;;  %s480_s22 = int_to_ptr.hbm [resolvable:$true] %s479_s22 }
  0x1a   : > { %1395 = dma.hbm_to_vmem [thread:$0]  (!%p1393_p6), %s457_s0, 512, %s459_s1, [#allocation10], %s1652_s29, %s1652_s29, %s1653_s19  }
  0x1b   : > { %1398 = dma.hbm_to_vmem [thread:$0]  (!%p1393_p6), %s480_s22, 512, %s482_s28, [#allocation10], %s1652_s29, %s1652_s29, %s1653_s19  }
  0x1c   : > { %s38_s7 = ssub.s32 %s1648_s27, %s1794_s21  ;;  %s41_s11 = sadd.s32 1, %s1644_s26 }
  0x1d   : > { %p39_p7 = scmp.eq.s32.totalorder %s38_s7, 0  ;;  %p48_p8 = scmp.ne.s32.totalorder %s1644_s26, %s1640_s25 }
  0x1e   : > { %p49_p9 = scmp.eq.s32.totalorder %s1648_s27, 0  ;;  %p54_p10 = scmp.ne.s32.totalorder %s1640_s25, %s1636_s24 }
  0x1f   : > { %s1805_s23 = scalar_select %p39_p7, %s1644_s26, %s41_s11  }
  0x20   : > { %p1807_p11 = por %p49_p9, %p48_p8  ;;  %p1813_p12 = por %p55_p1, %p54_p10 }
  0x21   : > { %2123 = sst [smem:[#allocation19_spill]] %s1805_s23  ;;  %p414_p13 = scmp.eq.s32.totalorder %s1775_s30, 1 }
  0x22   : > { %p420_p0 = scmp.eq.s32.totalorder %s1346_s20, 1  ;;  %p1409_p2 = scmp.lt.s32.totalorder %s1648_s27, 2 }
  0x23   : > { %s510_s1 = sand.u32 1, %s1644_s26   ;;  %p1820_p4 = por %p414_p13, %p48_p8 }
  0x24   : > { %p1824_p6 = por %p420_p0, %p54_p10  ;;  %s1351_s22 = sshll.u32 %s510_s1, 3 }
  0x25   : > { %s2126_s7 = scalar_select %p1820_p4, 1, 0 }
  0x26   : > { %s2128_s11 = scalar_select %p1824_p6, 1, 0 }
  0x27   : > { %2127 = sst [smem:[#allocation20_spill]] %s2126_s7  ;;  %s1352_s28 = sshll.u32 %s1648_s27, 3 }
  0x28   : > { %2129 = sst [smem:[#allocation21_spill]] %s2128_s11  ;;  %s514_s24 = scalar_lea.vmem [#allocation6], %s1351_s22 }
  0x29   : > { %s2130_s23 = sld [smem:[#allocation22_spill]]  ;;  %s522_s17 = sshll.u32 %s514_s24, 4  ;;  %s523_s17 = int_to_ptr.vmem [resolvable:$true] %s522_s17 }
  0x2a   : > { %p1834_p7 = pnand %p1409_p2, %p1807_p11  ;;  %s511_s26 = scalar_lea.sflag [#allocation7], %s510_s1 }
  0x2c   : > { %p1552_p9 = pneg %p1834_p7 }
  0x2f   : > { %s518_s21 = scalar_lea.hbm %s2130_s23, %s1352_s28 }
  0x30   : > { %s520_s15 = sshll.u32 %s518_s21, 4  ;;  %s1555_s21 = scalar_lea.hbm %s2130_s23, 16  ;;  %s521_s15 = int_to_ptr.hbm [resolvable:$true] %s520_s15 }
  0x31   : > { %s1548_s7 = sshra.s32 %s521_s15, 4  ;;  %s1549_s7 = int_to_ptr.hbm [resolvable:$true] %s1548_s7 }
  0x32   : > { %s1550_s11 = scalar_lea.hbm %s1549_s7, 8  ;;  %p1556_p11 = scmp.lt.s32.totalorder %s1549_s7, %s2130_s23 }
  0x33   : > { %p1551_p8 = scmp.ne.s32.totalorder %s1549_s7, %s1550_s11  ;;  %p1557_p0 = scmp.lt.s32.totalorder %s1555_s21, %s1550_s11 }
  0x35   : > { %p1553_p10 = pnand %p1552_p9, %p1551_p8  ;;  %p1558_p2 = por %p1557_p0, %p1556_p11 }
  0x37   : > { %p1554_p13 = pneg %p1553_p10 }
  0x39   : > { %p1559_p5 = pnand %p1558_p2, %p1554_p13 }
  0x3b   : > { %1562 = shalt.err (!%p1559_p5)
}
  0x3c   : > { %1402 = dma.hbm_to_vmem [thread:$0]  (!%p1834_p7), %s521_s15, 128, %s523_s17, %s511_s26  }
  0x3d   : > { %531 = sbr.rel (%p1780_p3) target bundleno = 1820 (0x71c), region = 88  ;;  %s1851_s1 = sand.u32 (!%p1780_p3), 1, %s1640_s25  }
  0x3e   : > { %s1354_s29 = sshll.u32 (!%p1780_p3), %s1851_s1, 3  ;;  %s534_s19 = scalar_lea.sflag (!%p1780_p3), [#allocation7], %s1851_s1 }
  0x3f   : > { %s537_s7 = scalar_lea.vmem (!%p1780_p3), [#allocation6], %s1354_s29 }
  0x42   : > { %1623 = dma.done.wait (%p1813_p12), %s534_s19, 128  }
  0x43   : > { %1625 = vsyncadd (%p1813_p12), %s534_s19, 4294967168 }
  0x44   : > { %1627 = dma.done.wait (%p55_p1), [#allocation10], 1024  }
  0x45   : > { %1629 = vsyncadd (%p55_p1), [#allocation10], 4294966272  ;;  %s2132_s26 = sld [smem:[#allocation23_spill]]  ;;  %v1877_v4 = vld [vmem:[%s537_s7] sm:$0xff]  ;;  %vm608_vm0 = vcmask 261120   ;;  %v635_v5 = vld [vmem:[%s2084_s3 + $0x18] sm:$0xff] }
  0x46   : > { %v634_v6 = vld [vmem:[%s2084_s3 + $0x10] sm:$0xff]  ;;  %v633_v7 = vld [vmem:[%s2084_s3 + $0x8] sm:$0xff]  ;;  %v632_v8 = vld [vmem:[%s2084_s3] sm:$0xff]  ;;  %s2134_s2 = sld [smem:[#allocation24_spill]]  ;;  %vm688_vm1 = vcmask 64512   ;;  %s1654_s15 = smov 112  }
  0x47   : > { %v663_v9 = vld [vmem:[%s2086_s5 + $0x18] sm:$0xff]  ;;  %v662_v10 = vld [vmem:[%s2086_s5 + $0x10] sm:$0xff]  ;;  %v661_v11 = vld [vmem:[%s2086_s5 + $0x8] sm:$0xff]  ;;  %s1655_s7 = smov 120   ;;  %s1656_s11 = smov 104  }
  0x48   : > { %680 = vmatpush.msra.mxu2 %v663_v9  ;;  %v1457_v15 = vld [vmem:[%s2085_s4] ss:$0 sm:$0xff]  ;;  %s1657_s21 = smov 8   ;;  %s1658_s28 = smov 16  }
  0x49   : > { %v660_v20 = vld [vmem:[%s2086_s5] sm:$0xff]  ;;  %s1659_s16 = smov 24   ;;  %s1377_s19 = sshll.u32 %s1775_s30, 3 }
  0x4a   : > { %681 = vmatpush.msra.mxu2 %v662_v10  ;;  %v1458_v33 = vld [vmem:[%s2087_s6] ss:$0 sm:$0xff]  ;;  %s2140_s20 = sld [smem:[#allocation29_spill]]  ;;  %s598_s30 = scalar_lea.vmem [#allocation12], %s1354_s29 }
  0x4b   : > { %s2133_s18 = smov %s2132_s26  ;;  %v603_v0 = vld [vmem:[%s2132_s26 + $0x18] sm:$0xff]  ;;  %s2139_s26 = sld [smem:[#allocation27_spill]] }
  0x4c   : > { %v602_v1 = vld [vmem:[%s2133_s18 + $0x10] sm:$0xff]  ;;  %624 = vmatpush.msra.mxu1 %v603_v0  ;;  %v601_v2 = vld [vmem:[%s2133_s18 + $0x8] sm:$0xff]  ;;  %v600_v3 = vld [vmem:[%s2133_s18] sm:$0xff]  ;;  %682 = vmatpush.msra.mxu2 %v661_v11 }
  0x4d   : > { %v1456_v12 = vld [vmem:[%s2134_s2] ss:$0 sm:$0xff] }
  0x4e   : > { %625 = vmatpush.msra.mxu1 %v602_v1  ;;  %683 = vmatpush.msra.mxu2 %v660_v20 }
  0x4f   : > { %1360 = vmatmul.msk.f32.vlgmr.msra.gmra.mxu2 %vm608_vm0, %v1877_v4 }
  0x50   : > { %626 = vmatpush.msra.mxu1 %v601_v2  ;;  %s1252_s22 = scalar_lea.hbm %s2140_s20, %s1377_s19  ;;  %s1598_s29 = scalar_lea.hbm %s2140_s20, 16 }
  0x51   : > { %s1256_s2 = sshll.u32 %s1252_s22, 4  ;;  %s1257_s2 = int_to_ptr.hbm [resolvable:$true] %s1256_s2 }
  0x52   : > { %627 = vmatpush.msra.mxu1 %v600_v3  ;;  %s1592_s17 = sshra.s32 %s1257_s2, 4  ;;  %s1593_s17 = int_to_ptr.hbm [resolvable:$true] %s1592_s17 }
  0x53   : > { %1358 = vmatmul.msk.f32.vlgmr.msra.gmra.mxu1 %vm608_vm0, %v1877_v4  ;;  %s1594_s19 = scalar_lea.hbm %s1593_s17, 8  ;;  %p1599_p12 = scmp.lt.s32.totalorder %s1593_s17, %s2140_s20 }
  0x54   : > { %652 = vmatpush.msrb.mxu1 %v635_v5  ;;  %p1595_p1 = scmp.ne.s32.totalorder %s1593_s17, %s1594_s19  ;;  %p1600_p7 = scmp.lt.s32.totalorder %s1598_s29, %s1594_s19 }
  0x56   : > { %653 = vmatpush.msrb.mxu1 %v634_v6  ;;  %p1596_p3 = pnand %p1595_p1, %p1820_p4  ;;  %p1601_p8 = por %p1600_p7, %p1599_p12 }
  0x58   : > { %654 = vmatpush.msrb.mxu1 %v633_v7  ;;  %p1597_p5 = pneg %p1596_p3 }
  0x5a   : > { %655 = vmatpush.msrb.mxu1 %v632_v8  ;;  %p1602_p9 = pnand %p1601_p8, %p1597_p5 }
  0x5b   : > { %1359 = vmatmul.msk.f32.vlgmr.msrb.gmra.mxu1 %vm608_vm0, %v1877_v4 }
  0xd0   : > { %v629_v13 = vpop.f32.mrf.mxu1 }
  0xd1   : > { %v630_v14 = vadd.f32 %v1456_v12, %v629_v13 }
  0xd2   : > { %v685_v34 = vpop.f32.mrf.mxu2 }
  0xd3   : > { %689 = vst.msk [vmem:[#allocation2] sm:$0xff] %vm688_vm1, %v630_v14  ;;  %710 = vrot.lane.b32.xlu2 %v630_v14, %s1654_s15  ;;  %v686_v35 = vadd.f32 %v1458_v33, %v685_v34 }
  0xd5   : > { %691 = vst.msk [vmem:[#allocation4] sm:$0xff] %vm688_vm1, %v686_v35 }
  0xd8   : > { %v657_v16 = vpop.f32.mrf.mxu1 }
  0xd9   : > { %v658_v17 = vadd.f32 %v1457_v15, %v657_v16 }
  0xda   : > { %v740_v19 = vld [vmem:[#allocation2] sm:$0xff] }
  0xdb   : > { %690 = vst.msk [vmem:[#allocation3] sm:$0xff] %vm688_vm1, %v658_v17  ;;  %715 = vrot.lane.b32.xlu1 %v658_v17, %s1654_s15  ;;  %699 = vrot.lane.b32.xlu0 %v658_v17, %s1655_s7 }
  0xdc   : > { %725 = vrot.lane.b32.xlu2 %v630_v14, %s1656_s11  ;;  %v748_v36 = vld [vmem:[#allocation4] sm:$0xff] }
  0xdd   : > { %910 = vmatpush.msrb.mxu2 %v748_v36 }
  0xe2   : > { %v744_v18 = vld [vmem:[#allocation3] sm:$0xff] }
  0xe3   : > { %730 = vrot.lane.b32.xlu1 %v658_v17, %s1656_s11  ;;  %1361 = vmatpush.xpose.msk.msra.mxu3 %vm688_vm1, %v744_v18 }
  0xe4   : > { %693 = vrot.lane.b32.xlu0 %v630_v14, %s1655_s7 }
  0xe6   : > { %1362 = vmatmul.msk.f32.vlgmr.msra.gmra.mxu3 %vm688_vm1, %v740_v19 }
  0xeb   : > { %705 = vrot.lane.b32.xlu1 %v686_v35, %s1655_s7 }
 0x12d   : > { %v711_v21 = vpop.permute.xlu2 %710 }
 0x12e   : > { %714 = vst.msk [vmem:[#allocation2 + $0x10] sm:$0xff] %vm688_vm1, %v711_v21 }
 0x135   : > { %v742_v29 = vld [vmem:[#allocation2 + $0x10] sm:$0xff] }
 0x136   : > { %v726_v22 = vpop.permute.xlu2 %725 }
 0x137   : > { %729 = vst.msk [vmem:[#allocation2 + $0x18] sm:$0xff] %vm688_vm1, %v726_v22 }
 0x13e   : > { %v743_v32 = vld [vmem:[#allocation2 + $0x18] sm:$0xff] }
 0x14d   : > { %v716_v23 = vpop.permute.xlu1 %715  ;;  %v700_v24 = vpop.permute.xlu0 %699 }
 0x14e   : > { %719 = vst.msk [vmem:[#allocation3 + $0x10] sm:$0xff] %vm688_vm1, %v716_v23 }
 0x14f   : > { %703 = vst.msk [vmem:[#allocation3 + $0x8] sm:$0xff] %vm688_vm1, %v700_v24 }
 0x155   : > { %v731_v25 = vpop.permute.xlu1 %730  ;;  %v746_v26 = vld [vmem:[#allocation3 + $0x10] sm:$0xff] }
 0x156   : > { %734 = vst.msk [vmem:[#allocation3 + $0x18] sm:$0xff] %vm688_vm1, %v731_v25  ;;  %v694_v27 = vpop.permute.xlu0 %693  ;;  %v745_v28 = vld [vmem:[#allocation3 + $0x8] sm:$0xff]  ;;  %1365 = vmatpush.xpose.msk.msra.mxu0 %vm688_vm1, %v746_v26 }
 0x157   : > { %697 = vst.msk [vmem:[#allocation2 + $0x8] sm:$0xff] %vm688_vm1, %v694_v27  ;;  %1363 = vmatpush.xpose.msk.msrb.mxu3 %vm688_vm1, %v745_v28 }
 0x159   : > { %1366 = vmatmul.msk.f32.vlgmr.msra.gmra.mxu0 %vm688_vm1, %v742_v29 }
 0x15d   : > { %v747_v30 = vld [vmem:[#allocation3 + $0x18] sm:$0xff]  ;;  %v706_v45 = vpop.permute.xlu1 %705 }
 0x15e   : > { %v741_v31 = vld [vmem:[#allocation2 + $0x8] sm:$0xff]  ;;  %1367 = vmatpush.xpose.msk.msra.mxu1 %vm688_vm1, %v747_v30  ;;  %709 = vst.msk [vmem:[#allocation4 + $0x8] sm:$0xff] %vm688_vm1, %v706_v45 }
 0x15f   : > { %1364 = vmatmul.msk.f32.vlgmr.msrb.gmra.mxu3 %vm688_vm1, %v741_v31 }
 0x161   : > { %1368 = vmatmul.msk.f32.vlgmr.msra.gmra.mxu1 %vm688_vm1, %v743_v32 }
 0x165   : > { %v749_v46 = vld [vmem:[#allocation4 + $0x8] sm:$0xff] }
 0x166   : > { %933 = vmatpush.msra.mxu3 %v749_v46 }
 0x169   : > { %v775_v39 = vpop.f32.mrf.mxu3 }
 0x16a   : > { %v856_v44 = vsel %vm688_vm1, %v775_v39, -inf }
 0x1d6   : > { %v827_v37 = vpop.f32.mrf.mxu0 }
 0x1d7   : > { %v862_v38 = vsel %vm688_vm1, %v827_v37, -inf }
 0x1d8   : > { %863 = vmax.xlane.f32.xlu2 %v862_v38 }
 0x1de   : > { %v853_v40 = vpop.f32.mrf.mxu1 }
 0x1df   : > { %v865_v41 = vsel %vm688_vm1, %v853_v40, -inf }
 0x1e0   : > { %866 = vmax.xlane.f32.xlu1 %v865_v41 }
 0x1e2   : > { %v801_v42 = vpop.f32.mrf.mxu3 }
 0x1e3   : > { %v859_v43 = vsel %vm688_vm1, %v801_v42, -inf }
 0x1e4   : > { %860 = vmax.xlane.f32.xlu0 %v859_v43 }
 0x1e8   : > { %857 = vmax.xlane.f32.xlu1 %v856_v44 }
 0x1f0   : > { %720 = vrot.lane.b32.xlu2 %v686_v35, %s1654_s15  ;;  %s1242_s15 = scalar_lea.sflag [#allocation8], %s1851_s1 }
 0x1f8   : > { %735 = vrot.lane.b32.xlu0 %v686_v35, %s1656_s11 }
 0x24b   : > { %v864_v47 = vpop.xlane.xlu2 %863 }
 0x24c   : > { %v870_v48 = vsub.f32 %v827_v37, %v864_v47 }
 0x24e   : > { %v876_v49 = vmul.f32 1.442695, %v870_v48  ;;  %v1172_v48 = vld [vmem:[%s2094_s13 + $0x8] sm:$0xff] }
 0x250   : > { %1466 = vpow2.f32 %v876_v49 }
 0x253   : > { %v867_v50 = vpop.xlane.xlu1 %866  ;;  %v721_v51 = vpop.permute.xlu2 %720 }
 0x254   : > { %v871_v52 = vsub.f32 %v853_v40, %v867_v50  ;;  %724 = vst.msk [vmem:[#allocation4 + $0x10] sm:$0xff] %vm688_vm1, %v721_v51 }
 0x256   : > { %v1467_v53 = vpop.eup %1466  ;;  %v878_v54 = vmul.f32 1.442695, %v871_v52 }
 0x257   : > { %v861_v55 = vpop.xlane.xlu0 %860  ;;  %v886_v56 = vsel %vm688_vm1, %v1467_v53, 0.0 }
 0x258   : > { %1468 = vpow2.f32 %v878_v54  ;;  %v869_v57 = vsub.f32 %v801_v42, %v861_v55  ;;  %887 = vadd.xlane.f32.xlu0 %v886_v56 }
 0x25a   : > { %v874_v58 = vmul.f32 1.442695, %v869_v57 }
 0x25b   : > { %v858_v59 = vpop.xlane.xlu1 %857  ;;  %v750_v60 = vld [vmem:[#allocation4 + $0x10] sm:$0xff] }
 0x25c   : > { %1470 = vpow2.f32 %v874_v58  ;;  %v868_v61 = vsub.f32 %v775_v39, %v858_v59  ;;  %956 = vmatpush.msrb.mxu0 %v750_v60 }
 0x25d   : > { %1371 = vmatmul.msk.f32.vlgmr.msrb.gmra.mxu0 %vm688_vm1, %v1467_v53 }
 0x25e   : > { %v1469_v62 = vpop.eup %1468  ;;  %v872_v63 = vmul.f32 1.442695, %v868_v61 }
 0x25f   : > { %v889_v0 = vsel %vm688_vm1, %v1469_v62, 0.0 }
 0x260   : > { %1472 = vpow2.f32 %v872_v63  ;;  %890 = vadd.xlane.f32.xlu2 %v889_v0  ;;  %v1070_v63 = vld [vmem:[#allocation9 + $0x10] sm:$0xff]  ;;  %v1069_v0 = vld [vmem:[#allocation9 + $0x8] sm:$0xff] }
 0x262   : > { %v1471_v1 = vpop.eup %1470 }
 0x263   : > { %1370 = vmatmul.msk.f32.vlgmr.msra.gmra.mxu3 %vm688_vm1, %v1471_v1  ;;  %v883_v2 = vsel %vm688_vm1, %v1471_v1, 0.0  ;;  %v1068_v1 = vld [vmem:[#allocation9] sm:$0xff] }
 0x264   : > { %884 = vadd.xlane.f32.xlu1 %v883_v2 }
 0x266   : > { %v1473_v3 = vpop.eup %1472 }
 0x267   : > { %1369 = vmatmul.msk.f32.vlgmr.msrb.gmra.mxu2 %vm688_vm1, %v1473_v3  ;;  %v880_v6 = vsel %vm688_vm1, %v1473_v3, 0.0 }
 0x26a   : > { %v736_v5 = vpop.permute.xlu0 %735 }
 0x26b   : > { %739 = vst.msk [vmem:[#allocation4 + $0x18] sm:$0xff] %vm688_vm1, %v736_v5 }
 0x26c   : > { %881 = vadd.xlane.f32.xlu1 %v880_v6 }
 0x272   : > { %v751_v7 = vld [vmem:[#allocation4 + $0x18] sm:$0xff] }
 0x273   : > { %979 = vmatpush.msrb.mxu1 %v751_v7  ;;  %v1459_v7 = vld [vmem:[%s2089_s8] ss:$0 sm:$0xff] }
 0x274   : > { %1372 = vmatmul.msk.f32.vlgmr.msrb.gmra.mxu1 %vm688_vm1, %v1469_v62  ;;  %v1071_v62 = vld [vmem:[#allocation9 + $0x18] sm:$0xff] }
 0x275   : > { %1091 = vmatpush.msra.mxu2 %v1071_v62 }
 0x277   : > { %1092 = vmatpush.msra.mxu2 %v1070_v63 }
 0x279   : > { %1093 = vmatpush.msra.mxu2 %v1069_v0 }
 0x27b   : > { %1094 = vmatpush.msra.mxu2 %v1068_v1 }
 0x2cb   : > { %v888_v8 = vpop.xlane.xlu0 %887 }
 0x2cc   : > { %1474 = vrcp.f32 %v888_v8  ;;  %v1025_v32 = vand.u32 2147483648, %v888_v8  ;;  %vm1019_vm7 = vweird.f32 %v888_v8  ;;  %v1023_v35 = vand.u32 2147483647, %v888_v8 }
 0x2ce   : > { %v1026_v45 = vor.u32 1.1754944e-38, %v1025_v32  ;;  %vm1024_vm12 = vcmp.eq.f32.partialorder %v1023_v35, 8.507059e+37  ;;  %v1175_v32 = vld [vmem:[%s2094_s13 + $0x20] sm:$0xff] }
 0x2d2   : > { %v1475_v11 = vpop.eup %1474 }
 0x2d3   : > { %v1959_v9 = vpop.xlane.xlu2 %890  ;;  %v1015_v13 = vmul.f32 %v1475_v11, %v888_v8  ;;  %vm1020_vm4 = vweird.f32 %v1475_v11 }
 0x2d4   : > { %1476 = vrcp.f32 %v1959_v9  ;;  %vm1968_vm8 = vmor %vm1019_vm7, %vm1020_vm4  ;;  %v1040_v41 = vand.u32 2147483648, %v1959_v9  ;;  %vm1034_vm11 = vweird.f32 %v1959_v9  ;;  %v1038_v46 = vand.u32 2147483647, %v1959_v9 }
 0x2d5   : > { %v1016_v16 = vsub.f32 1.0, %v1015_v13  ;;  %vm1053_vm4 = vcmask 130112  }
 0x2d6   : > { %v1041_v53 = vor.u32 1.1754944e-38, %v1040_v41  ;;  %v1460_v41 = vld [vmem:[%s2090_s9] ss:$0 sm:$0xff] }
 0x2d7   : > { %v885_v10 = vpop.xlane.xlu1 %884  ;;  %v1017_v22 = vmul.f32 %v1475_v11, %v1016_v16 }
 0x2d8   : > { %1478 = vrcp.f32 %v885_v10  ;;  %v1010_v21 = vand.u32 2147483648, %v885_v10  ;;  %v1008_v24 = vand.u32 2147483647, %v885_v10  ;;  %vm1004_vm3 = vweird.f32 %v885_v10 }
 0x2d9   : > { %v1018_v29 = vadd.f32 %v1475_v11, %v1017_v22 }
 0x2da   : > { %v1962_v12 = vpop.eup %1476  ;;  %v1011_v27 = vor.u32 1.1754944e-38, %v1010_v21  ;;  %vm1009_vm6 = vcmp.eq.f32.partialorder %v1008_v24, 8.507059e+37  ;;  %v958_v54 = vpop.f32.mrf.mxu0  ;;  %v1141_v24 = vld [vmem:[#allocation11 + $0x10] sm:$0xff] }
 0x2db   : > { %v1030_v15 = vmul.f32 %v1962_v12, %v1959_v9  ;;  %vm1035_vm9 = vweird.f32 %v1962_v12  ;;  %v1022_v42 = vsel %vm1968_vm8, %v1475_v11, %v1018_v29  ;;  %v1176_v29 = vld [vmem:[%s2094_s13 + $0x28] sm:$0xff] }
 0x2dc   : > { %vm1979_vm14 = vmor %vm1034_vm11, %vm1035_vm9  ;;  %v1027_v49 = vsel %vm1024_vm12, %v1026_v45, %v1022_v42 }
 0x2dd   : > { %v1031_v20 = vsub.f32 1.0, %v1030_v15  ;;  %v1046_v57 = vmul.f32 %v1027_v49, %v958_v54  ;;  %v1171_v49 = vld [vmem:[%s2094_s13] sm:$0xff] }
 0x2de   : > { %v1479_v14 = vpop.eup %1478  ;;  %v1463_v54 = vld [vmem:[%s2095_s14] ss:$0 sm:$0xff] }
 0x2df   : > { %v1000_v17 = vmul.f32 %v1479_v14, %v885_v10  ;;  %v882_v18 = vpop.xlane.xlu1 %881  ;;  %vm1005_vm2 = vweird.f32 %v1479_v14  ;;  %v1032_v28 = vmul.f32 %v1962_v12, %v1031_v20 }
 0x2e0   : > { %1480 = vrcp.f32 %v882_v18  ;;  %vm1006_vm5 = vmor %vm1004_vm3, %vm1005_vm2  ;;  %v995_v39 = vand.u32 2147483648, %v882_v18  ;;  %v993_v44 = vand.u32 2147483647, %v882_v18  ;;  %vm989_vm13 = vweird.f32 %v882_v18 }
 0x2e1   : > { %v1001_v19 = vsub.f32 1.0, %v1000_v17  ;;  %v1033_v40 = vadd.f32 %v1962_v12, %v1032_v28  ;;  %vm1039_vm3 = vcmp.eq.f32.partialorder %v1038_v46, 8.507059e+37  ;;  %v1177_v28 = vld [vmem:[%s2094_s13 + $0x30] sm:$0xff] }
 0x2e2   : > { %v996_v50 = vor.u32 1.1754944e-38, %v995_v39  ;;  %vm994_vm2 = vcmp.eq.f32.partialorder %v993_v44, 8.507059e+37  ;;  %v1461_v44 = vld [vmem:[%s2091_s10] ss:$0 sm:$0xff] }
 0x2e3   : > { %v1002_v23 = vmul.f32 %v1479_v14, %v1001_v19  ;;  %v1037_v51 = vsel %vm1979_vm14, %v1962_v12, %v1033_v40  ;;  %v1660_v12 = vmov 32.0  }
 0x2e4   : > { %v1042_v60 = vsel %vm1039_vm3, %v1041_v53, %v1037_v51  ;;  %1482 = vrcp.f32 %v1660_v12 }
 0x2e5   : > { %v1003_v25 = vadd.f32 %v1479_v14, %v1002_v23  ;;  %v1142_v23 = vld [vmem:[#allocation11 + $0x18] sm:$0xff] }
 0x2e6   : > { %v1481_v26 = vpop.eup %1480  ;;  %v935_v33 = vpop.f32.mrf.mxu3  ;;  %1162 = vmatpush.msrb.mxu3 %v1142_v23 }
 0x2e7   : > { %v985_v30 = vmul.f32 %v1481_v26, %v882_v18  ;;  %v1007_v31 = vsel %vm1006_vm5, %v1479_v14, %v1003_v25  ;;  %vm990_vm10 = vweird.f32 %v1481_v26  ;;  %vm1059_vm5 = vcmask 195712   ;;  %v1140_v25 = vld [vmem:[#allocation11 + $0x8] sm:$0xff] }
 0x2e8   : > { %v1012_v34 = vsel %vm1009_vm6, %v1011_v27, %v1007_v31  ;;  %vm991_vm15 = vmor %vm989_vm13, %vm990_vm10  ;;  %vm1065_vm6 = vcmask 261312   ;;  %1163 = vmatpush.msrb.mxu3 %v1141_v24  ;;  %v1178_v27 = vld [vmem:[%s2094_s13 + $0x38] sm:$0xff]  ;;  %vm1183_vm10 = vcmask 523264  }
 0x2e9   : > { %v986_v36 = vsub.f32 1.0, %v985_v30  ;;  %v1045_v37 = vmul.f32 %v1012_v34, %v935_v33  ;;  %1195 = vmatpush.msra.mxu0 %v1178_v27  ;;  %v1174_v34 = vld [vmem:[%s2094_s13 + $0x18] sm:$0xff] }
 0x2ea   : > { %v912_v55 = vpop.f32.mrf.mxu2  ;;  %v1483_v13 = vpop.eup %1482  ;;  %1164 = vmatpush.msrb.mxu3 %v1140_v25 }
 0x2eb   : > { %v987_v43 = vmul.f32 %v1481_v26, %v986_v36  ;;  %1050 = vrot.lane.b32.xlu1 %v1045_v37, %s1657_s21  ;;  %v1106_v14 = vmul.f32 32.0, %v1483_v13  ;;  %1196 = vmatpush.msra.mxu0 %v1177_v28 }
 0x2ed   : > { %v988_v47 = vadd.f32 %v1481_v26, %v987_v43  ;;  %v1107_v15 = vsub.f32 1.0, %v1106_v14  ;;  %1197 = vmatpush.msra.mxu0 %v1176_v29 }
 0x2ef   : > { %v992_v52 = vsel %vm991_vm15, %v1481_v26, %v988_v47  ;;  %v1108_v16 = vmul.f32 %v1483_v13, %v1107_v15  ;;  %v1139_v26 = vld [vmem:[#allocation11] sm:$0xff]  ;;  %1198 = vmatpush.msra.mxu0 %v1175_v32  ;;  %v1173_v47 = vld [vmem:[%s2094_s13 + $0x10] sm:$0xff] }
 0x2f0   : > { %v997_v56 = vsel %vm994_vm2, %v996_v50, %v992_v52  ;;  %1165 = vmatpush.msrb.mxu3 %v1139_v26  ;;  %v1462_v50 = vld [vmem:[%s2093_s12] ss:$0 sm:$0xff] }
 0x2f1   : > { %v1044_v58 = vmul.f32 %v997_v56, %v912_v55  ;;  %v981_v59 = vpop.f32.mrf.mxu1  ;;  %v1109_v17 = vadd.f32 %v1483_v13, %v1108_v16  ;;  %1199 = vmatpush.msra.mxu0 %v1174_v34 }
 0x2f2   : > { %v1047_v61 = vmul.f32 %v1042_v60, %v981_v59 }
 0x2f3   : > { %1048 = vst.msk [vmem:[#allocation5] sm:$0xff] %vm688_vm1, %v1044_v58  ;;  %1056 = vrot.lane.b32.xlu1 %v1046_v57, %s1658_s28  ;;  %vm1110_vm1 = vweird.f32 %v1483_v13  ;;  %1200 = vmatpush.msra.mxu0 %v1173_v47  ;;  %s2142_s28 = sld [smem:[#allocation28_spill]] }
 0x2f4   : > { %1062 = vrot.lane.b32.xlu0 %v1047_v61, %s1659_s16  ;;  %v1993_v18 = vsel %vm1110_vm1, %v1483_v13, %v1109_v17  ;;  %s1254_s16 = sshll.u32 %s598_s30, 4  ;;  %s1255_s16 = int_to_ptr.vmem [resolvable:$true] %s1254_s16 }
 0x2f5   : > { %1201 = vmatpush.msra.mxu0 %v1172_v48 }
 0x2f7   : > { %1202 = vmatpush.msra.mxu0 %v1171_v49 }
 0x2f9   : > { %v1465_v13 = vld [vmem:[%s2142_s28] ss:$0 sm:$0xff] }
 0x35d   : > { %v1051_v2 = vpop.permute.xlu1 %1050 }
 0x35e   : > { %1054 = vst.msk [vmem:[#allocation5] sm:$0xff] %vm1053_vm4, %v1051_v2 }
 0x365   : > { %v1057_v3 = vpop.permute.xlu1 %1056 }
 0x366   : > { %1060 = vst.msk [vmem:[#allocation5] sm:$0xff] %vm1059_vm5, %v1057_v3  ;;  %v1063_v5 = vpop.permute.xlu0 %1062 }
 0x367   : > { %1066 = vst.msk [vmem:[#allocation5] sm:$0xff] %vm1065_vm6, %v1063_v5 }
 0x36e   : > { %v1067_v6 = vld [vmem:[#allocation5] sm:$0xff] }
 0x36f   : > { %1373 = vmatmul.msk.f32.vlgmr.msra.gmra.mxu2 %vm608_vm0, %v1067_v6 }
 0x3f2   : > { %v1096_v8 = vpop.f32.mrf.mxu2 }
 0x3f3   : > { %v1097_v9 = vadd.f32 %v1459_v7, %v1096_v8 }
 0x3f5   : > { %v1099_v10 = vadd.f32 %v1097_v9, %v1877_v4 }
 0x3f7   : > { %v1102_v11 = vsel %vm608_vm0, %v1099_v10, 0.0 }
 0x3f8   : > { %1103 = vadd.xlane.f32.xlu2 %v1102_v11 }
 0x46b   : > { %v1104_v19 = vpop.xlane.xlu2 %1103 }
 0x46c   : > { %v1112_v20 = vmul.f32 %v1993_v18, %v1104_v19 }
 0x46e   : > { %v1113_v21 = vsub.f32 %v1099_v10, %v1112_v20  ;;  %v1464_v10 = vld [vmem:[%s2139_s26] ss:$0 sm:$0xff] }
 0x470   : > { %v1114_v22 = vmul.f32 %v1113_v21, %v1113_v21 }
 0x472   : > { %v1115_v4 = vsel %vm608_vm0, %v1114_v22, 0.0 }
 0x473   : > { %1116 = vadd.xlane.f32.xlu1 %v1115_v4 }
 0x4e6   : > { %v1117_v30 = vpop.xlane.xlu1 %1116 }
 0x4e7   : > { %v1118_v31 = vmul.f32 %v1117_v30, %v1993_v18 }
 0x4e9   : > { %v1119_v33 = vadd.f32 1e-05, %v1118_v31 }
 0x4eb   : > { %1484 = vrsqrt.f32 %v1119_v33  ;;  %vm1126_vm8 = vweird.f32 %v1119_v33 }
 0x4f1   : > { %v1485_v35 = vpop.eup %1484 }
 0x4f2   : > { %v1121_v36 = vmul.f32 %v1485_v35, %v1119_v33  ;;  %vm1127_vm7 = vweird.f32 %v1485_v35 }
 0x4f3   : > { %vm1128_vm9 = vmor %vm1126_vm8, %vm1127_vm7 }
 0x4f4   : > { %v1122_v37 = vmul.f32 %v1485_v35, %v1121_v36 }
 0x4f6   : > { %v1123_v38 = vmul.f32 0.5, %v1122_v37 }
 0x4f8   : > { %v1124_v39 = vsub.f32 1.5, %v1123_v38 }
 0x4fa   : > { %v1125_v40 = vmul.f32 %v1485_v35, %v1124_v39 }
 0x4fc   : > { %v1129_v42 = vsel %vm1128_vm9, %v1485_v35, %v1125_v40 }
 0x4fd   : > { %v1130_v43 = vmul.f32 %v1129_v42, %v1113_v21 }
 0x4ff   : > { %v1134_v45 = vmul.f32 %v1460_v41, %v1130_v43 }
 0x501   : > { %v1138_v46 = vadd.f32 %v1461_v44, %v1134_v45 }
 0x503   : > { %1374 = vmatmul.msk.f32.vlgmr.msrb.gmra.mxu3 %vm608_vm0, %v1138_v46 }
 0x586   : > { %v1167_v51 = vpop.f32.mrf.mxu3 }
 0x587   : > { %v1168_v52 = vadd.f32 %v1462_v50, %v1167_v51 }
 0x589   : > { %v1170_v53 = vmax.f32 %v1168_v52, 0.0 }
 0x58b   : > { %1375 = vmatmul.msk.f32.vlgmr.msra.gmra.mxu0 %vm1183_vm10, %v1170_v53 }
 0x608   : > { %v1204_v55 = vpop.f32.mrf.mxu0 }
 0x609   : > { %v1205_v56 = vadd.f32 %v1463_v54, %v1204_v55 }
 0x60b   : > { %v1207_v57 = vadd.f32 %v1205_v56, %v1138_v46 }
 0x60d   : > { %v1210_v58 = vsel %vm608_vm0, %v1207_v57, 0.0 }
 0x60e   : > { %1211 = vadd.xlane.f32.xlu2 %v1210_v58 }
 0x681   : > { %v1212_v59 = vpop.xlane.xlu2 %1211 }
 0x682   : > { %v1213_v60 = vmul.f32 %v1212_v59, %v1993_v18 }
 0x684   : > { %v1214_v61 = vsub.f32 %v1207_v57, %v1213_v60 }
 0x686   : > { %v1215_v62 = vmul.f32 %v1214_v61, %v1214_v61 }
 0x688   : > { %v1216_v63 = vsel %vm608_vm0, %v1215_v62, 0.0 }
 0x689   : > { %1217 = vadd.xlane.f32.xlu2 %v1216_v63 }
 0x6fc   : > { %v1218_v0 = vpop.xlane.xlu2 %1217 }
 0x6fd   : > { %v1219_v1 = vmul.f32 %v1218_v0, %v1993_v18 }
 0x6ff   : > { %v1220_v2 = vadd.f32 1e-05, %v1219_v1 }
 0x701   : > { %1486 = vrsqrt.f32 %v1220_v2  ;;  %vm1227_vm12 = vweird.f32 %v1220_v2 }
 0x707   : > { %v1487_v3 = vpop.eup %1486 }
 0x708   : > { %v1222_v5 = vmul.f32 %v1487_v3, %v1220_v2  ;;  %vm1228_vm11 = vweird.f32 %v1487_v3 }
 0x709   : > { %vm1229_vm13 = vmor %vm1227_vm12, %vm1228_vm11 }
 0x70a   : > { %v1223_v6 = vmul.f32 %v1487_v3, %v1222_v5 }
 0x70c   : > { %v1224_v7 = vmul.f32 0.5, %v1223_v6 }
 0x70e   : > { %v1225_v8 = vsub.f32 1.5, %v1224_v7 }
 0x710   : > { %v1226_v9 = vmul.f32 %v1487_v3, %v1225_v8 }
 0x712   : > { %v1230_v11 = vsel %vm1229_vm13, %v1487_v3, %v1226_v9 }
 0x713   : > { %v1231_v12 = vmul.f32 %v1230_v11, %v1214_v61 }
 0x715   : > { %v1235_v14 = vmul.f32 %v1464_v10, %v1231_v12 }
 0x717   : > { %v1239_v15 = vadd.f32 %v1465_v13, %v1235_v14 }
 0x719   : > { %1240 = vst.msk [vmem:[%s598_s30] sm:$0xff] %vm608_vm0, %v1239_v15 }
 0x71a   : > { %1605 = shalt.err (!%p1602_p9)
}
 0x71b   : > { %1390 = dma.vmem_to_hbm [thread:$0]  (%p1820_p4), %s1255_s16, 128, %s1257_s2, %s1242_s15  }
 0x71c PF: > { %s2143_s1 = sld [smem:[#allocation16_spill]]  ;;  %p2145_p10 = scmp.ge.s32.totalorder %s1648_s27, 2 }
 0x71e   : > { %p1404_p13 = pnand %p2145_p10, %p1824_p6 }
 0x720   : > { %p1405_p11 = pneg %p1404_p13 }
 0x722   : > { %s1268_s21 = sand.u32 1, %s2143_s1  }
 0x723   : > { %s1269_s28 = scalar_lea.sflag [#allocation8], %s1268_s21 }
 0x724   : > { %1631 = dma.done.wait (%p1405_p11), %s1269_s28, 128  }
 0x725   : > { %1633 = vsyncadd (%p1405_p11), %s1269_s28, 4294967168  ;;  %s2146_s27 = sld [smem:[#allocation18_spill]]  ;;  %s2149_s24 = smov %s1640_s25 }
 0x726   : > { %s2147_s30 = sld [smem:[#allocation17_spill]] }
 0x727   : > { %s2148_s26 = sld [smem:[#allocation19_spill]] }
 0x72b   : > { %p31_p0 = scmp.ge.s32.totalorder %s2146_s27, 4  }
 0x72c   : > { %s2150_s25 = smov %s2147_s30 }
 0x72d   :  { %33 = sbr.rel (!%p31_p0) target bundleno = 15 (0xf), region = 150 }
 0x732   :  { %1275 = vsyncpa [#allocation7], 1 }
 0x733   :  { %1277 = vsyncpa [#allocation7 + $0x1], 1 }
 0x734   :  { %1278 = vsyncpa [#allocation10], 1 }
 0x735   :  { %1279 = vsyncpa [#allocation8], 1 }
 0x736   :  { %1281 = vsyncpa [#allocation8 + $0x1], 1 }

</bundles_post_ra>
